<compile_context>
chip_gen: v6e
topology: v6e:2x2x1
jax: 0.10.0
libtpu: 0.0.40
codegen_flags: <defaults>
</compile_context>

<pallas_src>
import math

import jax
import jax.numpy as jnp
from jax import lax
from jax.experimental import pallas as pl
from jax.experimental.pallas import tpu as pltpu

LANE = 128


def _round_up(x, m):
    return ((x + m - 1) // m) * m


def _pick_tile(b_pad, block_b):
    """Largest lane-multiple tile <= block_b that divides b_pad, preferring >=2 grid steps."""
    n_chunks = b_pad // LANE
    max_k = max(1, min(block_b // LANE, n_chunks))
    if n_chunks >= 2:                               # let v7x's 2 TensorCores both work
        max_k = min(max_k, max(1, n_chunks // 2))
    k = 1
    for cand in range(max_k, 0, -1):
        if n_chunks % cand == 0:
            k = cand
            break
    return LANE * k


def _vmem_limit_bytes(tile_b, state_dim, action_dim, nf, n_out, mm_bytes):
    def pad_s(n):
        return _round_up(max(n, 1), 8)

    def pad_l(n):
        return _round_up(max(n, 1), LANE)

    resident = mm_bytes * (pad_s(nf) * pad_l(state_dim)
                           + pad_s(nf) * pad_l(action_dim)
                           + pad_s(nf) * pad_l(nf)
                           + pad_s(n_out) * pad_l(nf))
    resident += 4 * (2 * pad_s(nf) + pad_s(n_out)) * pad_l(1)        # f32 biases
    stream_in = 2 * mm_bytes * (pad_s(state_dim) + pad_s(action_dim)) * tile_b  # dbl-buffered
    stream_out = 2 * 4 * pad_s(n_out) * tile_b
    staging = 2 * 4 * pad_s(nf) * tile_b                              # h1 / h2 f32 staging
    est = 2 * (resident + stream_in + stream_out + staging) + (4 << 20)
    return int(min(est, 64 << 20))


def _make_critic_kernel(single_output, precision):
    def kernel(sT_ref, aT_ref, w1s_ref, w1a_ref, b1_ref,
               w2_ref, b2_ref, w3_ref, b3_ref, qT_ref):
        # Layer 1 (fused concat): h1^T = W1s @ s^T + W1a @ a^T + b1   -> (nf, tile_b)
        h1 = (jnp.dot(w1s_ref[...], sT_ref[...],
                      preferred_element_type=jnp.float32, precision=precision)
              + jnp.dot(w1a_ref[...], aT_ref[...],
                        preferred_element_type=jnp.float32, precision=precision)
              + b1_ref[...])
        h1 = jnp.maximum(h1, 0.0)

        # Layer 2: h2^T = W2 @ h1^T + b2
        h2 = (jnp.dot(w2_ref[...], h1.astype(w2_ref.dtype),
                      preferred_element_type=jnp.float32, precision=precision)
              + b2_ref[...])
        h2 = jnp.maximum(h2, 0.0)

        # Layer 3: q^T = W3 @ h2^T + b3   -> (n_output, tile_b), lane-dense store
        q = jnp.dot(w3_ref[...], h2.astype(w3_ref.dtype),
                    preferred_element_type=jnp.float32, precision=precision)
        if single_output:
            q = q + b3_ref[0, 0]          # scalar bias from SMEM
        else:
            q = q + b3_ref[...]           # (n_output, 1) column bias from VMEM
        qT_ref[...] = q.astype(qT_ref.dtype)

    return kernel


def critic_forward(state, action, params, *, block_b=512, use_bf16=True):
    """Pallas forward pass for CriticNetwork. Returns torch.squeeze-like Q values."""
    state = state.astype(jnp.float32)
    action = action.astype(jnp.float32)
    w1, b1, w2, b2, w3, b3 = params          # PyTorch layout: W (out, in), b (1, out)

    batch, state_dim = state.shape
    action_dim = action.shape[1]
    nf = w1.shape[0]
    n_output = w3.shape[0]
    single_output = (n_output == 1)

    mm_dtype = jnp.bfloat16 if use_bf16 else jnp.float32
    precision = None if use_bf16 else lax.Precision.HIGHEST

    # Weights stay in (out, in) layout; split W1 by columns so concat never materializes.
    w1s = w1[:, :state_dim].astype(mm_dtype)            # (nf, state_dim)
    w1a = w1[:, state_dim:].astype(mm_dtype)            # (nf, action_dim)
    w2k = w2.astype(mm_dtype)                           # (nf, nf)
    w3k = w3.astype(mm_dtype)                           # (n_output, nf)
    b1c = jnp.transpose(b1).astype(jnp.float32)         # (nf, 1)  lane-broadcast column
    b2c = jnp.transpose(b2).astype(jnp.float32)         # (nf, 1)
    if single_output:
        b3k = b3.reshape(1, 1).astype(jnp.float32)      # scalar -> SMEM
    else:
        b3k = jnp.transpose(b3).astype(jnp.float32)     # (n_output, 1) -> VMEM column

    # Transposed inputs: batch on the lane axis; pad batch only to a lane multiple.
    b_pad = _round_up(batch, LANE)
    tile_b = _pick_tile(b_pad, max(LANE, _round_up(block_b, LANE)))
    sT = jnp.transpose(state).astype(mm_dtype)          # (state_dim, batch)
    aT = jnp.transpose(action).astype(mm_dtype)         # (action_dim, batch)
    if b_pad != batch:
        sT = jnp.pad(sT, ((0, 0), (0, b_pad - batch)))
        aT = jnp.pad(aT, ((0, 0), (0, b_pad - batch)))
    grid = (b_pad // tile_b,)

    def resident(shape):
        return pl.BlockSpec(shape, lambda i: (0, 0))

    b3_spec = (pl.BlockSpec(memory_space=pltpu.MemorySpace.SMEM) if single_output
               else resident(b3k.shape))

    mm_bytes = jnp.dtype(mm_dtype).itemsize
    vmem_limit = _vmem_limit_bytes(tile_b, state_dim, action_dim, nf, n_output, mm_bytes)

    qT = pl.pallas_call(
        _make_critic_kernel(single_output, precision),
        out_shape=jax.ShapeDtypeStruct((n_output, b_pad), jnp.float32),
        grid=grid,
        in_specs=[
            pl.BlockSpec((state_dim, tile_b), lambda i: (0, i)),    # s^T tile (lane-dense)
            pl.BlockSpec((action_dim, tile_b), lambda i: (0, i)),   # a^T tile
            resident(w1s.shape),
            resident(w1a.shape),
            resident(b1c.shape),
            resident(w2k.shape),
            resident(b2c.shape),
            resident(w3k.shape),
            b3_spec,
        ],
        out_specs=pl.BlockSpec((n_output, tile_b), lambda i: (0, i)),
        compiler_params=pltpu.CompilerParams(
            dimension_semantics=("parallel",),          # batch tiles shard across TCs
            vmem_limit_bytes=vmem_limit),
    )(sT, aT, w1s, w1a, b1c, w2k, b2c, w3k, b3k)

    # (n_output, batch) -> (batch, n_output) -> torch.squeeze semantics
    return jnp.squeeze(jnp.transpose(qT[:, :batch]))


def _xavier_uniform(key, shape, gain):
    # shape = (fan_out, fan_in) as in nn.Linear.weight
    fan_out, fan_in = shape
    a = gain * math.sqrt(6.0 / (fan_in + fan_out))
    return jax.random.uniform(key, shape, jnp.float32, -a, a)


def init_params(key, n_input, n_features, n_output):
    k1, k2, k3, kb1, kb2, kb3 = jax.random.split(key, 6)
    relu_gain = math.sqrt(2.0)   # nn.init.calculate_gain('relu')
    lin_gain = 1.0               # nn.init.calculate_gain('linear')
    w1 = _xavier_uniform(k1, (n_features, n_input), relu_gain)
    w2 = _xavier_uniform(k2, (n_features, n_features), relu_gain)
    w3 = _xavier_uniform(k3, (n_output, n_features), lin_gain)
    # nn.Linear default bias init: U(-1/sqrt(fan_in), 1/sqrt(fan_in)); kept as (1, out)
    b1 = jax.random.uniform(kb1, (1, n_features), jnp.float32,
                            -1.0 / math.sqrt(n_input), 1.0 / math.sqrt(n_input))
    b2 = jax.random.uniform(kb2, (1, n_features), jnp.float32,
                            -1.0 / math.sqrt(n_features), 1.0 / math.sqrt(n_features))
    b3 = jax.random.uniform(kb3, (1, n_output), jnp.float32,
                            -1.0 / math.sqrt(n_features), 1.0 / math.sqrt(n_features))
    return (w1, b1, w2, b2, w3, b3)


def _reference_forward(state, action, params):
    """Plain-JAX reference matching the PyTorch module (true-f32 matmuls)."""
    w1, b1, w2, b2, w3, b3 = params
    hp = lax.Precision.HIGHEST
    x = jnp.concatenate([state.astype(jnp.float32), action.astype(jnp.float32)], axis=1)
    h1 = jnp.maximum(jnp.dot(x, w1.T, precision=hp) + b1, 0.0)
    h2 = jnp.maximum(jnp.dot(h1, w2.T, precision=hp) + b2, 0.0)
    q = jnp.dot(h2, w3.T, precision=hp) + b3
    return jnp.squeeze(q)


if __name__ == "__main__":
    key = jax.random.PRNGKey(0)
    k_state, k_action, k_params = jax.random.split(key, 3)

    batch = 2
    state_dim = 12
    action_dim = 4
    n_input = state_dim + action_dim          # input_shape[-1]
    n_features = 32
    n_output = 1                              # output_shape[0]

    state = jax.random.normal(k_state, (batch, state_dim), jnp.float32)
    action = jax.random.normal(k_action, (batch, action_dim), jnp.float32)
    params = init_params(k_params, n_input, n_features, n_output)

    q_ref = _reference_forward(state, action, params)

    # Exact-f32 path (HIGHEST-precision MXU dots).
    q_f32 = critic_forward(state, action, params, use_bf16=False)
    jax.block_until_ready(q_f32)
    assert q_f32.shape == (batch,)                      # torch.squeeze of (B, 1) -> (B,)
    assert jnp.allclose(q_f32, q_ref, atol=1e-5, rtol=1e-5)

    # Default bf16-streaming path (f32 accumulation).
    q_bf16 = critic_forward(state, action, params)
    jax.block_until_ready(q_bf16)
    assert q_bf16.shape == (batch,)
    assert jnp.allclose(q_bf16, q_ref, atol=5e-2, rtol=5e-2)

    # Multi-tile grid coverage: batch not a multiple of the tile.
    k_s2, k_a2 = jax.random.split(jax.random.PRNGKey(1), 2)
    batch2 = 300
    state2 = jax.random.normal(k_s2, (batch2, state_dim), jnp.float32)
    action2 = jax.random.normal(k_a2, (batch2, action_dim), jnp.float32)
    q2 = critic_forward(state2, action2, params, use_bf16=False, block_b=256)
    jax.block_until_ready(q2)
    assert q2.shape == (batch2,)
    assert jnp.allclose(q2, _reference_forward(state2, action2, params),
                        atol=1e-5, rtol=1e-5)

    print("KERNEL_OK")
</pallas_src>

<mosaic_0001>
module attributes {stable_mosaic.version = 11 : i64} {
  func.func @kernel(%arg0: i32, %arg1: memref<12x128xf32, #tpu.memory_space<vmem>>, %arg2: memref<4x128xf32, #tpu.memory_space<vmem>>, %arg3: memref<32x12xf32, #tpu.memory_space<vmem>>, %arg4: memref<32x4xf32, #tpu.memory_space<vmem>>, %arg5: memref<32x1xf32, #tpu.memory_space<vmem>>, %arg6: memref<32x32xf32, #tpu.memory_space<vmem>>, %arg7: memref<32x1xf32, #tpu.memory_space<vmem>>, %arg8: memref<1x32xf32, #tpu.memory_space<vmem>>, %arg9: memref<1x1xf32, #tpu.memory_space<smem>>, %arg10: memref<1x128xf32, #tpu.memory_space<vmem>>) attributes {dimension_semantics = [#tpu.dimension_semantics<parallel>], iteration_bounds = array<i64: 1>, scalar_prefetch = 0 : i64, scratch_operands = 0 : i64, tpu.core_type = #tpu.core_type<tc>, window_params = [{transform_indices = @transform_0, window_bounds = array<i64: 12, 128>}, {transform_indices = @transform_1, window_bounds = array<i64: 4, 128>}, {pipeline_mode = #tpu.pipeline_mode<synchronous>, transform_indices = @transform_2, window_bounds = array<i64: 32, 12>}, {pipeline_mode = #tpu.pipeline_mode<synchronous>, transform_indices = @transform_3, window_bounds = array<i64: 32, 4>}, {pipeline_mode = #tpu.pipeline_mode<synchronous>, transform_indices = @transform_4, window_bounds = array<i64: 32, 1>}, {pipeline_mode = #tpu.pipeline_mode<synchronous>, transform_indices = @transform_5, window_bounds = array<i64: 32, 32>}, {pipeline_mode = #tpu.pipeline_mode<synchronous>, transform_indices = @transform_6, window_bounds = array<i64: 32, 1>}, {pipeline_mode = #tpu.pipeline_mode<synchronous>, transform_indices = @transform_7, window_bounds = array<i64: 1, 32>}, {transform_indices = @transform_8, window_bounds = array<i64: 1, 1>}, {transform_indices = @transform_9, window_bounds = array<i64: 1, 128>}]} {
    %c0 = arith.constant 0 : index
    %c0_0 = arith.constant 0 : index
    %0 = vector.load %arg3[%c0, %c0_0] : memref<32x12xf32, #tpu.memory_space<vmem>>, vector<32x12xf32>
    %c0_1 = arith.constant 0 : index
    %c0_2 = arith.constant 0 : index
    %1 = vector.load %arg1[%c0_1, %c0_2] : memref<12x128xf32, #tpu.memory_space<vmem>>, vector<12x128xf32>
    %cst = arith.constant dense<0.000000e+00> : vector<32x128xf32>
    %2 = tpu.matmul %0, %1, %cst {dimension_numbers = #tpu.dot_dimension_numbers<[1], [0], [0], [1], [0, 0, 1, 1], [], []>, precision = #tpu.contract_precision<fp32>} : vector<32x12xf32>, vector<12x128xf32>, vector<32x128xf32> -> vector<32x128xf32>
    %c0_3 = arith.constant 0 : index
    %c0_4 = arith.constant 0 : index
    %3 = vector.load %arg4[%c0_3, %c0_4] : memref<32x4xf32, #tpu.memory_space<vmem>>, vector<32x4xf32>
    %c0_5 = arith.constant 0 : index
    %c0_6 = arith.constant 0 : index
    %4 = vector.load %arg2[%c0_5, %c0_6] : memref<4x128xf32, #tpu.memory_space<vmem>>, vector<4x128xf32>
    %cst_7 = arith.constant dense<0.000000e+00> : vector<32x128xf32>
    %5 = tpu.matmul %3, %4, %cst_7 {dimension_numbers = #tpu.dot_dimension_numbers<[1], [0], [0], [1], [0, 0, 1, 1], [], []>, precision = #tpu.contract_precision<fp32>} : vector<32x4xf32>, vector<4x128xf32>, vector<32x128xf32> -> vector<32x128xf32>
    %6 = arith.addf %2, %5 : vector<32x128xf32>
    %c0_8 = arith.constant 0 : index
    %c0_9 = arith.constant 0 : index
    %7 = vector.load %arg5[%c0_8, %c0_9] : memref<32x1xf32, #tpu.memory_space<vmem>>, vector<32x1xf32>
    %8 = vector.broadcast %7 : vector<32x1xf32> to vector<32x128xf32>
    %9 = arith.addf %6, %8 : vector<32x128xf32>
    %cst_10 = arith.constant 0.000000e+00 : f32
    %10 = vector.broadcast %cst_10 : f32 to vector<32x128xf32>
    %11 = arith.maximumf %9, %10 : vector<32x128xf32>
    %c0_11 = arith.constant 0 : index
    %c0_12 = arith.constant 0 : index
    %12 = vector.load %arg6[%c0_11, %c0_12] : memref<32x32xf32, #tpu.memory_space<vmem>>, vector<32x32xf32>
    %cst_13 = arith.constant dense<0.000000e+00> : vector<32x128xf32>
    %13 = tpu.matmul %12, %11, %cst_13 {dimension_numbers = #tpu.dot_dimension_numbers<[1], [0], [0], [1], [0, 0, 1, 1], [], []>, precision = #tpu.contract_precision<fp32>} : vector<32x32xf32>, vector<32x128xf32>, vector<32x128xf32> -> vector<32x128xf32>
    %c0_14 = arith.constant 0 : index
    %c0_15 = arith.constant 0 : index
    %14 = vector.load %arg7[%c0_14, %c0_15] : memref<32x1xf32, #tpu.memory_space<vmem>>, vector<32x1xf32>
    %15 = vector.broadcast %14 : vector<32x1xf32> to vector<32x128xf32>
    %16 = arith.addf %13, %15 : vector<32x128xf32>
    %cst_16 = arith.constant 0.000000e+00 : f32
    %17 = vector.broadcast %cst_16 : f32 to vector<32x128xf32>
    %18 = arith.maximumf %16, %17 : vector<32x128xf32>
    %c0_17 = arith.constant 0 : index
    %c0_18 = arith.constant 0 : index
    %19 = vector.load %arg8[%c0_17, %c0_18] : memref<1x32xf32, #tpu.memory_space<vmem>>, vector<1x32xf32>
    %cst_19 = arith.constant dense<0.000000e+00> : vector<1x128xf32>
    %20 = tpu.matmul %19, %18, %cst_19 {dimension_numbers = #tpu.dot_dimension_numbers<[1], [0], [0], [1], [0, 0, 1, 1], [], []>, precision = #tpu.contract_precision<fp32>} : vector<1x32xf32>, vector<32x128xf32>, vector<1x128xf32> -> vector<1x128xf32>
    %c0_20 = arith.constant 0 : index
    %c0_21 = arith.constant 0 : index
    %21 = memref.load %arg9[%c0_20, %c0_21] : memref<1x1xf32, #tpu.memory_space<smem>>
    %22 = vector.broadcast %21 : f32 to vector<1x128xf32>
    %23 = arith.addf %20, %22 : vector<1x128xf32>
    %c0_22 = arith.constant 0 : index
    %c0_23 = arith.constant 0 : index
    %24 = vector.load %arg10[%c0_22, %c0_23] : memref<1x128xf32, #tpu.memory_space<vmem>>, vector<1x128xf32>
    tpu.vector_store %arg10[%c0_22, %c0_23], %23 {strides = array<i32>} : memref<1x128xf32, #tpu.memory_space<vmem>>, vector<1x128xf32>,
    return
  }
  func.func @transform_0(%arg0: i32) -> (i32, i32) {
    %c0_i32 = arith.constant 0 : i32
    %c0_i32_0 = arith.constant 0 : i32
    return %c0_i32, %arg0 : i32, i32
  }
  func.func @transform_1(%arg0: i32) -> (i32, i32) {
    %c0_i32 = arith.constant 0 : i32
    %c0_i32_0 = arith.constant 0 : i32
    return %c0_i32, %arg0 : i32, i32
  }
  func.func @transform_2(%arg0: i32) -> (i32, i32) {
    %c0_i32 = arith.constant 0 : i32
    %c0_i32_0 = arith.constant 0 : i32
    %c0_i32_1 = arith.constant 0 : i32
    return %c0_i32, %c0_i32_0 : i32, i32
  }
  func.func @transform_3(%arg0: i32) -> (i32, i32) {
    %c0_i32 = arith.constant 0 : i32
    %c0_i32_0 = arith.constant 0 : i32
    %c0_i32_1 = arith.constant 0 : i32
    return %c0_i32, %c0_i32_0 : i32, i32
  }
  func.func @transform_4(%arg0: i32) -> (i32, i32) {
    %c0_i32 = arith.constant 0 : i32
    %c0_i32_0 = arith.constant 0 : i32
    %c0_i32_1 = arith.constant 0 : i32
    return %c0_i32, %c0_i32_0 : i32, i32
  }
  func.func @transform_5(%arg0: i32) -> (i32, i32) {
    %c0_i32 = arith.constant 0 : i32
    %c0_i32_0 = arith.constant 0 : i32
    %c0_i32_1 = arith.constant 0 : i32
    return %c0_i32, %c0_i32_0 : i32, i32
  }
  func.func @transform_6(%arg0: i32) -> (i32, i32) {
    %c0_i32 = arith.constant 0 : i32
    %c0_i32_0 = arith.constant 0 : i32
    %c0_i32_1 = arith.constant 0 : i32
    return %c0_i32, %c0_i32_0 : i32, i32
  }
  func.func @transform_7(%arg0: i32) -> (i32, i32) {
    %c0_i32 = arith.constant 0 : i32
    %c0_i32_0 = arith.constant 0 : i32
    %c0_i32_1 = arith.constant 0 : i32
    return %c0_i32, %c0_i32_0 : i32, i32
  }
  func.func @transform_8(%arg0: i32) -> (i32, i32) {
    %c0_i32 = arith.constant 0 : i32
    %c0_i32_0 = arith.constant 0 : i32
    %c0_i32_1 = arith.constant 0 : i32
    return %c0_i32, %c0_i32_0 : i32, i32
  }
  func.func @transform_9(%arg0: i32) -> (i32, i32) {
    %c0_i32 = arith.constant 0 : i32
    %c0_i32_0 = arith.constant 0 : i32
    return %c0_i32, %arg0 : i32, i32
  }
}

</mosaic_0001>

<bundles_post_ra>
// kernel: tpu_custom_call.1
= control target key start
LH: loop header
LB: loop body
LE: loop exit
PB: predicated region body
PF: predicated region fallthrough
CT: control target
= control target key end

     0   :  { %vm58_vm0 = vcmask 1043456   ;;  %vm45_vm1 = vcmask 31744   ;;  %s3317_s0 = inlined_call_operand.vmem [shape: f32[12,128], index: 0, kind: input, shape index: {}]   ;;  %s3318_s1 = inlined_call_operand.vmem [shape: f32[4,128], index: 1, kind: input, shape index: {}]   ;;  %s3319_s2 = inlined_call_operand.vmem [shape: f32[32,12], index: 2, kind: input, shape index: {}]   ;;  %s3320_s3 = inlined_call_operand.vmem [shape: f32[32,4], index: 3, kind: input, shape index: {}]   ;;  %s3321_s4 = inlined_call_operand.vmem [shape: f32[32,1], index: 4, kind: input, shape index: {}]   ;;  %s3322_s5 = inlined_call_operand.vmem [shape: f32[32,32], index: 5, kind: input, shape index: {}]   ;;  %s3323_s6 = inlined_call_operand.vmem [shape: f32[32,1], index: 6, kind: input, shape index: {}]   ;;  %s3324_s7 = inlined_call_operand.vmem [shape: f32[1,32], index: 7, kind: input, shape index: {}]   ;;  %s3325_s8 = inlined_call_operand.<no memory space> [shape: f32[1,1], index: 8, kind: input, shape index: {}]   ;;  %s3326_s9 = inlined_call_operand.hbm [shape: f32[1,128], index: 9, kind: output, shape index: {}]  }
   0x1   :  { %v44_v0 = vld [vmem:[%s3318_s1] sm:$0xf]  ;;  %v41_v2 = vld [vmem:[%s3320_s3 + $0x8] sm:$0xff]  ;;  %v42_v6 = vld [vmem:[%s3320_s3 + $0x10] sm:$0xff] }
   0x2   :  { %v40_v1 = vld [vmem:[%s3320_s3] sm:$0xff]  ;;  %v60_v3 = vsel %vm58_vm0, %v44_v0, 0  ;;  %v50_v5 = vsel %vm45_vm1, %v41_v2, 0  ;;  %v43_v7 = vld [vmem:[%s3320_s3 + $0x18] sm:$0xff]  ;;  %v53_v11 = vsel %vm45_vm1, %v42_v6, 0 }
   0x3   :  { %v47_v4 = vsel %vm45_vm1, %v40_v1, 0  ;;  %v2938_v8 = vand.u32 4294901760, %v60_v3  ;;  %v2942_v10 = vand.u32 4294901760, %v50_v5  ;;  %v39_v12 = vld [vmem:[%s3317_s0 + $0x8] sm:$0xf]  ;;  %v2947_v13 = vand.u32 4294901760, %v53_v11 }
   0x4   :  { %v2940_v9 = vand.u32 4294901760, %v47_v4  ;;  %v56_v14 = vsel %vm45_vm1, %v43_v7, 0  ;;  %v651_v15 = vsel %vm58_vm0, %v39_v12, 0 }
   0x5   :  { %2582 = vmatprep.subr.mxu0 %v2938_v8  ;;  %v200_v17 = vsub.f32 %v60_v3, %v2938_v8  ;;  %v2954_v18 = vsub.f32 %v50_v5, %v2942_v10  ;;  %v2957_v19 = vand.u32 4294901760, %v56_v14  ;;  %v2961_v20 = vsub.f32 %v53_v11, %v2947_v13 }
   0x6   :  { %v129_v16 = vsub.f32 %v47_v4, %v2940_v9  ;;  %2592 = vmatprep.mubr.f32.mxu1 %v2940_v9  ;;  %2583 = vmatpush3.msra.mxu0 %v2938_v8  ;;  %v2963_v21 = vand.u32 4294901760, %v651_v15 }
   0x7   :  { %v201_v23 = vand.u32 4294901760, %v200_v17  ;;  %v140_v24 = vand.u32 4294901760, %v2954_v18  ;;  %2598 = vmatprep.subr.mxu0 %v200_v17  ;;  %v2967_v25 = vsub.f32 %v56_v14, %v2957_v19  ;;  %v150_v26 = vand.u32 4294901760, %v2961_v20 }
   0x8   :  { %v130_v22 = vand.u32 4294901760, %v129_v16 }
   0x9   :  { %15 = vsyncpa [#allocation4], 0  ;;  %v202_v28 = vsub.f32 %v200_v17, %v201_v23  ;;  %v141_v29 = vsub.f32 %v2954_v18, %v140_v24  ;;  %v160_v30 = vand.u32 4294901760, %v2967_v25  ;;  %v151_v31 = vsub.f32 %v2961_v20, %v150_v26  ;;  %v34_v33 = vld [vmem:[%s3319_s2] sm:$0xff]  ;;  %v35_v40 = vld [vmem:[%s3319_s2 + $0x8] sm:$0xff]  ;;  %s2871_s27 = smov [#allocation3]  }
   0xa   :  { %v131_v27 = vsub.f32 %v129_v16, %v130_v22  ;;  %v2976_v32 = vsub.f32 %v651_v15, %v2963_v21  ;;  %vm637_vm2 = vcmask 97280   ;;  %v38_v38 = vld [vmem:[%s3317_s0] sm:$0xff]  ;;  %v36_v45 = vld [vmem:[%s3319_s2 + $0x10] sm:$0xff]  ;;  %v37_v48 = vld [vmem:[%s3319_s2 + $0x18] sm:$0xff]  ;;  %v2868_v57 = vmov 0   ;;  %s2430_s2 = sshll.u32 %s2871_s27, 4  ;;  %s2431_s2 = int_to_ptr.vmem [resolvable:$true] %s2430_s2 }
   0xb   :  { %v203_v35 = vand.u32 4294901760, %v202_v28  ;;  %v142_v36 = vand.u32 4294901760, %v141_v29  ;;  %v161_v37 = vsub.f32 %v2967_v25, %v160_v30  ;;  %v152_v39 = vand.u32 4294901760, %v151_v31  ;;  %v1244_v54 = vld [vmem:[%s3321_s4 + $0x18] sm:$0xff]  ;;  %2844 = vset.pattern.permute.xlu0 %v2868_v57  ;;  %2845 = vset.pattern.permute.xlu1 %v2868_v57  ;;  %v1243_v0 = vld [vmem:[%s3321_s4 + $0x10] sm:$0xff]  ;;  %v1242_v4 = vld [vmem:[%s3321_s4 + $0x8] sm:$0xff]  ;;  %p2851_p1 = scmp.lt.s32.totalorder %s2431_s2, %s2431_s2 }
   0xc   :  { %v132_v34 = vand.u32 4294901760, %v131_v27  ;;  %v639_v41 = vsel %vm637_vm2, %v34_v33, 0  ;;  %v2992_v43 = vand.u32 4294901760, %v2976_v32  ;;  %v2994_v44 = vand.u32 4294901760, %v38_v38  ;;  %1262 = vperm.xlu0 %2844, %v1244_v54   ;;  %1252 = vperm.xlu1 %2845, %v1242_v4   ;;  %s2850_s28 = scalar_lea.vmem %s2431_s2, 32 }
   0xd   :  { %2590 = vmatprep.subr.mxu1 %v203_v35  ;;  %v162_v42 = vand.u32 4294901760, %v161_v37  ;;  %v642_v46 = vsel %vm637_vm2, %v35_v40, 0  ;;  %v3002_v47 = vand.u32 4294901760, %v639_v41  ;;  %v645_v49 = vsel %vm637_vm2, %v36_v45, 0 }
   0xe   :  { %2584 = vmatprep.mubr.f32.mxu0 %v132_v34  ;;  %2591 = vmatpush3.msra.mxu1 %v203_v35  ;;  %v792_v50 = vsub.f32 %v2976_v32, %v2992_v43  ;;  %v3013_v51 = vsub.f32 %v38_v38, %v2994_v44  ;;  %v3015_v52 = vand.u32 4294901760, %v642_v46  ;;  %v648_v53 = vsel %vm637_vm2, %v37_v48, 0 }
   0xf   :  { %2585 = vmatmul.mubr.f32.vlgmr.msra.gmra.mxu0 %v142_v36  ;;  %2593 = vmatmul.mubr.f32.vlgmr.msra.gmra.mxu1 %v2942_v10  ;;  %v3024_v55 = vsub.f32 %v639_v41, %v3002_v47  ;;  %v3026_v56 = vand.u32 4294901760, %v645_v49  ;;  %v3035_v61 = vand.u32 4294901760, %v648_v53  ;;  %vm1301_vm3 = vcmask 261120  }
  0x10   :  { %2599 = vmatpush3.msra.mxu0 %v200_v17  ;;  %2606 = vmatprep.subr.mxu1 %v2938_v8  ;;  %v793_v58 = vand.u32 4294901760, %v792_v50  ;;  %v3030_v59 = vand.u32 4294901760, %v3013_v51  ;;  %v3033_v60 = vsub.f32 %v642_v46, %v3015_v52  ;;  %v1241_v17 = vld [vmem:[%s3321_s4] sm:$0xff]  ;;  %vm2870_vm4 = vmmov 0  }
  0x11   :  { %2587 = vmatprep.mubr.f32.mxu0 %v152_v39  ;;  %2607 = vmatpush3.msra.mxu1 %v2938_v8  ;;  %v722_v62 = vand.u32 4294901760, %v3024_v55  ;;  %v3041_v63 = vsub.f32 %v645_v49, %v3026_v56  ;;  %v751_v3 = vsub.f32 %v648_v53, %v3035_v61 }
  0x12   :  { %2595 = vmatprep.mubr.f32.mxu1 %v2947_v13  ;;  %2614 = vmatprep.subr.mxu0 %v201_v23  ;;  %v799_v1 = vsub.f32 %v3013_v51, %v3030_v59  ;;  %v732_v2 = vand.u32 4294901760, %v3033_v60 }
  0x13   :  { %2588 = vmatmul.mubr.f32.gmra.mxu0 %v162_v42  ;;  %2596 = vmatmul.mubr.f32.gmra.mxu1 %v2957_v19  ;;  %v723_v5 = vsub.f32 %v3024_v55, %v722_v62  ;;  %v742_v6 = vand.u32 4294901760, %v3041_v63  ;;  %v752_v11 = vand.u32 4294901760, %v751_v3 }
  0x14   :  { %2600 = vmatprep.mubr.f32.mxu0 %v129_v16  ;;  %2608 = vmatprep.mubr.f32.mxu1 %v130_v22  ;;  %v800_v7 = vand.u32 4294901760, %v799_v1  ;;  %v1280_v16 = vld [vmem:[%s3323_s6 + $0x18] sm:$0xff] }
  0x15   :  { %2622 = vmatprep.subr.mxu1 %v2938_v8  ;;  %1257 = vperm.xlu0 %2844, %v1243_v0   ;;  %v743_v12 = vsub.f32 %v3041_v63, %v742_v6  ;;  %v753_v15 = vsub.f32 %v751_v3, %v752_v11 }
  0x16   :  { %1247 = vperm.xlu1 %2845, %v1241_v17  }
  0x17   :  { %2601 = vmatmul.mubr.f32.vlgmr.msra.gmra.mxu0 %v2954_v18  ;;  %2609 = vmatmul.mubr.f32.vlgmr.msra.gmra.mxu1 %v140_v24  ;;  %v1278_v18 = vld [vmem:[%s3323_s6 + $0x8] sm:$0xff] }
  0x18   :  { %2615 = vmatpush3.msra.mxu0 %v201_v23  ;;  %2603 = vmatprep.mubr.f32.mxu0 %v2961_v20  ;;  %v1277_v20 = vld [vmem:[%s3323_s6] sm:$0xff] }
  0x19   :  { %2623 = vmatpush3.msra.mxu1 %v2938_v8  ;;  %2611 = vmatprep.mubr.f32.mxu1 %v150_v26  ;;  %v733_v8 = vsub.f32 %v3033_v60, %v732_v2 }
  0x1a   :  { %2630 = vmatprep.subr.mxu0 %v2963_v21  ;;  %2640 = vmatprep.subr.mxu1 %v793_v58 }
  0x1b   :  { %2604 = vmatmul.mubr.f32.gmra.mxu0 %v2967_v25  ;;  %2612 = vmatmul.mubr.f32.gmra.mxu1 %v160_v30  ;;  %v734_v14 = vand.u32 4294901760, %v733_v8 }
  0x1c   :  { %2616 = vmatprep.mubr.f32.mxu0 %v2940_v9  ;;  %2624 = vmatprep.mubr.f32.mxu1 %v2940_v9  ;;  %v724_v9 = vand.u32 4294901760, %v723_v5 }
  0x1d   :  { %1298 = vperm.xlu0 %2844, %v1280_v16  }
  0x1f   :  { %2617 = vmatmul.mubr.f32.vlgmr.msra.gmra.mxu0 %v2942_v10  ;;  %2625 = vmatmul.mubr.f32.vlgmr.msra.gmra.mxu1 %v2942_v10  ;;  %v744_v10 = vand.u32 4294901760, %v743_v12 }
  0x20   :  { %2631 = vmatpush3.msra.mxu0 %v2963_v21  ;;  %2619 = vmatprep.mubr.f32.mxu0 %v2947_v13 }
  0x21   :  { %2641 = vmatpush3.msra.mxu1 %v793_v58  ;;  %2627 = vmatprep.mubr.f32.mxu1 %v2947_v13  ;;  %v754_v13 = vand.u32 4294901760, %v753_v15 }
  0x22   :  { %2632 = vmatprep.subr.mxu0 %v2994_v44  ;;  %2642 = vmatprep.subr.mxu1 %v800_v7 }
  0x23   :  { %2620 = vmatmul.mubr.f32.gmra.mxu0 %v2957_v19  ;;  %2628 = vmatmul.mubr.f32.gmra.mxu1 %v2957_v19  ;;  %v1279_v19 = vld [vmem:[%s3323_s6 + $0x10] sm:$0xff] }
  0x24   :  { %2633 = vmatpush3.msra.mxu0 %v2994_v44  ;;  %2634 = vmatprep.mubr.f32.mxu0 %v724_v9 }
  0x25   :  { %2643 = vmatpush3.msra.mxu1 %v800_v7  ;;  %2644 = vmatprep.mubr.f32.mxu1 %v3002_v47 }
  0x26   :  { %2650 = vmatprep.subr.mxu0 %v2976_v32  ;;  %2660 = vmatprep.subr.mxu1 %v2963_v21 }
  0x27   :  { %2635 = vmatmul.mubr.f32.vlgmr.msra.gmra.mxu0 %v734_v14  ;;  %2645 = vmatmul.mubr.f32.vlgmr.msra.gmra.mxu1 %v3015_v52 }
  0x28   :  { %2651 = vmatpush3.msra.mxu0 %v2976_v32  ;;  %2637 = vmatprep.mubr.f32.mxu0 %v744_v10 }
  0x29   :  { %2661 = vmatpush3.msra.mxu1 %v2963_v21  ;;  %2647 = vmatprep.mubr.f32.mxu1 %v3026_v56 }
  0x2a   :  { %2652 = vmatprep.subr.mxu0 %v3013_v51  ;;  %2662 = vmatprep.subr.mxu1 %v2994_v44 }
  0x2b   :  { %2638 = vmatmul.mubr.f32.gmra.mxu0 %v754_v13  ;;  %2648 = vmatmul.mubr.f32.gmra.mxu1 %v3035_v61 }
  0x2c   :  { %2653 = vmatpush3.msra.mxu0 %v3013_v51  ;;  %2654 = vmatprep.mubr.f32.mxu0 %v3024_v55 }
  0x2d   :  { %2663 = vmatpush3.msra.mxu1 %v2994_v44  ;;  %2664 = vmatprep.mubr.f32.mxu1 %v722_v62 }
  0x2e   :  { %2670 = vmatprep.subr.mxu0 %v2992_v43  ;;  %2680 = vmatprep.subr.mxu1 %v2963_v21 }
  0x2f   :  { %2655 = vmatmul.mubr.f32.vlgmr.msra.gmra.mxu0 %v3033_v60  ;;  %2665 = vmatmul.mubr.f32.vlgmr.msra.gmra.mxu1 %v732_v2 }
  0x30   :  { %2671 = vmatpush3.msra.mxu0 %v2992_v43  ;;  %2657 = vmatprep.mubr.f32.mxu0 %v3041_v63 }
  0x31   :  { %2681 = vmatpush3.msra.mxu1 %v2963_v21  ;;  %2667 = vmatprep.mubr.f32.mxu1 %v742_v6  ;;  %v1273_v21 = vld [vmem:[%s3322_s5] sm:$0xff] }
  0x32   :  { %2672 = vmatprep.subr.mxu0 %v3030_v59  ;;  %2682 = vmatprep.subr.mxu1 %v2994_v44  ;;  %v1303_v22 = vsel %vm1301_vm3, %v1273_v21, 0 }
  0x33   :  { %2658 = vmatmul.mubr.f32.gmra.mxu0 %v751_v3  ;;  %2668 = vmatmul.mubr.f32.gmra.mxu1 %v752_v11  ;;  %v3124_v23 = vand.u32 4294901760, %v1303_v22 }
  0x34   :  { %2673 = vmatpush3.msra.mxu0 %v3030_v59  ;;  %2674 = vmatprep.mubr.f32.mxu0 %v3002_v47 }
  0x35   :  { %2683 = vmatpush3.msra.mxu1 %v2994_v44  ;;  %2684 = vmatprep.mubr.f32.mxu1 %v3002_v47  ;;  %v3127_v24 = vsub.f32 %v1303_v22, %v3124_v23 }
  0x36   :  { %1288 = vperm.xlu0 %2844, %v1278_v18   ;;  %1293 = vperm.xlu1 %2845, %v1279_v19  }
  0x37   :  { %2675 = vmatmul.mubr.f32.vlgmr.msra.gmra.mxu0 %v3015_v52  ;;  %2685 = vmatmul.mubr.f32.vlgmr.msra.gmra.mxu1 %v3015_v52  ;;  %v1385_v25 = vand.u32 4294901760, %v3127_v24 }
  0x38   :  { %2677 = vmatprep.mubr.f32.mxu0 %v3026_v56  ;;  %2687 = vmatprep.mubr.f32.mxu1 %v3026_v56 }
  0x39   :  { %v1386_v26 = vsub.f32 %v3127_v24, %v1385_v25 }
  0x3a   :  { %1283 = vperm.xlu1 %2845, %v1277_v20  }
  0x3b   :  { %2678 = vmatmul.mubr.f32.gmra.mxu0 %v3035_v61  ;;  %2688 = vmatmul.mubr.f32.gmra.mxu1 %v3035_v61  ;;  %v1387_v27 = vand.u32 4294901760, %v1386_v26 }
  0x3c   :  { %2712 = vmatprep.mubr.f32.mxu1 %v3124_v23 }
  0x3d   :  { %2698 = vmatprep.mubr.f32.mxu0 %v1387_v27 }
  0xcf   :  { %v2586_v28 = vpop.f32.mrf.mxu0  ;;  %v2594_v29 = vpop.f32.mrf.mxu1 }
  0xd0   :  { %v247_v43 = vadd.f32 %v2594_v29, %v2586_v28 }
  0xd1   :  { %v134_v30 = vpop.f32.mrf.mxu0  ;;  %v240_v31 = vpop.f32.mrf.mxu1 }
  0xd2   :  { %v241_v46 = vadd.f32 %v240_v31, %v134_v30  ;;  %v1274_v31 = vld [vmem:[%s3322_s5 + $0x8] sm:$0xff] }
  0xd3   :  { %v2589_v32 = vpop.f32.mrf.mxu0  ;;  %v2597_v33 = vpop.f32.mrf.mxu1 }
  0xd4   :  { %v259_v50 = vadd.f32 %v2597_v33, %v2589_v32 }
  0xd5   :  { %v154_v34 = vpop.f32.mrf.mxu0  ;;  %v252_v35 = vpop.f32.mrf.mxu1 }
  0xd6   :  { %v253_v54 = vadd.f32 %v252_v35, %v154_v34 }
  0xd7   :  { %v2602_v36 = vpop.f32.mrf.mxu0  ;;  %v2610_v37 = vpop.f32.mrf.mxu1 }
  0xd8   :  { %v340_v47 = vadd.f32 %v2602_v36, %v247_v43  ;;  %v1275_v43 = vld [vmem:[%s3322_s5 + $0x10] sm:$0xff] }
  0xd9   :  { %v332_v38 = vpop.f32.mrf.mxu0  ;;  %v427_v39 = vpop.f32.mrf.mxu1 }
  0xda   :  { %v333_v51 = vadd.f32 %v332_v38, %v241_v46  ;;  %v436_v55 = vadd.f32 %v2610_v37, %v340_v47 }
  0xdb   :  { %v2605_v40 = vpop.f32.mrf.mxu0  ;;  %v2613_v41 = vpop.f32.mrf.mxu1 }
  0xdc   :  { %v354_v56 = vadd.f32 %v2605_v40, %v259_v50  ;;  %v428_v59 = vadd.f32 %v427_v39, %v333_v51  ;;  %v1306_v40 = vsel %vm1301_vm3, %v1274_v31, 0 }
  0xdd   :  { %v346_v42 = vpop.f32.mrf.mxu0  ;;  %v443_v44 = vpop.f32.mrf.mxu1  ;;  %v3144_v50 = vand.u32 4294901760, %v1306_v40 }
  0xde   :  { %v347_v60 = vadd.f32 %v346_v42, %v253_v54  ;;  %v452_v0 = vadd.f32 %v2613_v41, %v354_v56  ;;  %v1253_v41 = vpop.permute.xlu1 %1252  ;;  %v1263_v56 = vpop.permute.xlu0 %1262 }
  0xdf   :  { %v2618_v45 = vpop.f32.mrf.mxu0  ;;  %v2626_v48 = vpop.f32.mrf.mxu1 }
  0xe0   :  { %v532_v61 = vadd.f32 %v2618_v45, %v436_v55  ;;  %v444_v4 = vadd.f32 %v443_v44, %v347_v60  ;;  %v1309_v55 = vsel %vm1301_vm3, %v1275_v43, 0 }
  0xe1   :  { %v525_v49 = vpop.f32.mrf.mxu0  ;;  %v615_v52 = vpop.f32.mrf.mxu1 }
  0xe2   :  { %v526_v1 = vadd.f32 %v525_v49, %v428_v59  ;;  %v622_v5 = vadd.f32 %v2626_v48, %v532_v61  ;;  %v1276_v48 = vld [vmem:[%s3322_s5 + $0x18] sm:$0xff] }
  0xe3   :  { %v2621_v53 = vpop.f32.mrf.mxu0  ;;  %v2629_v57 = vpop.f32.mrf.mxu1 }
  0xe4   :  { %v544_v6 = vadd.f32 %v2621_v53, %v452_v0  ;;  %v616_v11 = vadd.f32 %v615_v52, %v526_v1  ;;  %v1248_v0 = vpop.permute.xlu1 %1247 }
  0xe5   :  { %v537_v58 = vpop.f32.mrf.mxu0  ;;  %v627_v62 = vpop.f32.mrf.mxu1 }
  0xe6   :  { %v538_v9 = vadd.f32 %v537_v58, %v444_v4  ;;  %v634_v10 = vadd.f32 %v2629_v57, %v544_v6  ;;  %v1312_v58 = vsel %vm1301_vm3, %v1276_v48, 0 }
  0xe7   :  { %v2636_v63 = vpop.f32.mrf.mxu0  ;;  %v2646_v2 = vpop.f32.mrf.mxu1 }
  0xe8   :  { %v737_v12 = vadd.f32 %v2636_v63, %v622_v5  ;;  %v628_v18 = vadd.f32 %v627_v62, %v538_v9 }
  0xe9   :  { %v726_v3 = vpop.f32.mrf.mxu0  ;;  %v837_v7 = vpop.f32.mrf.mxu1 }
  0xea   :  { %v727_v13 = vadd.f32 %v726_v3, %v616_v11  ;;  %v844_v19 = vadd.f32 %v2646_v2, %v737_v12  ;;  %v3149_v2 = vsub.f32 %v1306_v40, %v3144_v50  ;;  %v3151_v3 = vand.u32 4294901760, %v1309_v55 }
  0xeb   :  { %v2639_v8 = vpop.f32.mrf.mxu0  ;;  %v2649_v14 = vpop.f32.mrf.mxu1  ;;  %v3153_v11 = vand.u32 4294901760, %v1312_v58 }
  0xec   :  { %v757_v20 = vadd.f32 %v2639_v8, %v634_v10  ;;  %v838_v26 = vadd.f32 %v837_v7, %v727_v13  ;;  %v3158_v13 = vsub.f32 %v1309_v55, %v3151_v3 }
  0xed   :  { %v746_v15 = vpop.f32.mrf.mxu0  ;;  %v849_v16 = vpop.f32.mrf.mxu1 }
  0xee   :  { %v747_v27 = vadd.f32 %v746_v15, %v628_v18  ;;  %v856_v32 = vadd.f32 %v2649_v14, %v757_v20  ;;  %v1258_v15 = vpop.permute.xlu0 %1257  ;;  %v1395_v18 = vand.u32 4294901760, %v3149_v2  ;;  %v3164_v20 = vsub.f32 %v1312_v58, %v3153_v11 }
  0xef   :  { %v2656_v17 = vpop.f32.mrf.mxu0  ;;  %v2666_v21 = vpop.f32.mrf.mxu1 }
  0xf0   :  { %v939_v28 = vadd.f32 %v2656_v17, %v844_v19  ;;  %v850_v36 = vadd.f32 %v849_v16, %v747_v27  ;;  %v1405_v27 = vand.u32 4294901760, %v3158_v13 }
  0xf1   :  { %v931_v22 = vpop.f32.mrf.mxu0  ;;  %v1027_v29 = vpop.f32.mrf.mxu1 }
  0xf2   :  { %v932_v33 = vadd.f32 %v931_v22, %v838_v26  ;;  %v1036_v37 = vadd.f32 %v2666_v21, %v939_v28 }
  0xf3   :  { %v2659_v30 = vpop.f32.mrf.mxu0  ;;  %v2669_v34 = vpop.f32.mrf.mxu1 }
  0xf4   :  { %v953_v38 = vadd.f32 %v2659_v30, %v856_v32  ;;  %v1028_v44 = vadd.f32 %v1027_v29, %v932_v33  ;;  %v1396_v30 = vsub.f32 %v3149_v2, %v1395_v18  ;;  %v1415_v32 = vand.u32 4294901760, %v3164_v20 }
  0xf5   :  { %v945_v35 = vpop.f32.mrf.mxu0  ;;  %v1043_v39 = vpop.f32.mrf.mxu1 }
  0xf6   :  { %v946_v45 = vadd.f32 %v945_v35, %v850_v36  ;;  %v1052_v51 = vadd.f32 %v2669_v34, %v953_v38  ;;  %v1406_v35 = vsub.f32 %v3158_v13, %v1405_v27  ;;  %v1416_v40 = vsub.f32 %v3164_v20, %v1415_v32 }
  0xf7   :  { %v2676_v42 = vpop.f32.mrf.mxu0  ;;  %v2686_v47 = vpop.f32.mrf.mxu1 }
  0xf8   :  { %v1135_v46 = vadd.f32 %v2676_v42, %v1036_v37  ;;  %v1044_v59 = vadd.f32 %v1043_v39, %v946_v45  ;;  %v1397_v37 = vand.u32 4294901760, %v1396_v30 }
  0xf9   :  { %v1128_v49 = vpop.f32.mrf.mxu0  ;;  %v1219_v54 = vpop.f32.mrf.mxu1 }
  0xfa   :  { %v1226_v52 = vadd.f32 %v2686_v47, %v1135_v46  ;;  %v1129_v53 = vadd.f32 %v1128_v49, %v1028_v44  ;;  %v1407_v44 = vand.u32 4294901760, %v1406_v35  ;;  %v1417_v47 = vand.u32 4294901760, %v1416_v40 }
  0xfb   :  { %v2679_v57 = vpop.f32.mrf.mxu0  ;;  %v2689_v63 = vpop.f32.mrf.mxu1 }
  0xfc   :  { %v1266_v60 = vadd.f32 %v1253_v41, %v1226_v52  ;;  %v1220_v61 = vadd.f32 %v1219_v54, %v1129_v53  ;;  %v1147_v62 = vadd.f32 %v2679_v57, %v1052_v51  ;;  %v1299_v54 = vpop.permute.xlu0 %1298  ;;  %v1294_v57 = vpop.permute.xlu1 %1293 }
  0xfd   :  { %v1140_v1 = vpop.f32.mrf.mxu0  ;;  %v1231_v8 = vpop.f32.mrf.mxu1 }
  0xfe   :  { %v1270_v4 = vmax.f32 %v1266_v60, 0.0  ;;  %v1265_v5 = vadd.f32 %v1248_v0, %v1220_v61  ;;  %v1238_v6 = vadd.f32 %v2689_v63, %v1147_v62  ;;  %v1141_v7 = vadd.f32 %v1140_v1, %v1044_v59 }
 0x100   :  { %v1269_v9 = vmax.f32 %v1265_v5, 0.0  ;;  %v1268_v12 = vadd.f32 %v1263_v56, %v1238_v6  ;;  %v1232_v14 = vadd.f32 %v1231_v8, %v1141_v7  ;;  %v3155_v10 = vand.u32 4294901760, %v1270_v4  ;;  %v1289_v60 = vpop.permute.xlu0 %1288  ;;  %v1284_v63 = vpop.permute.xlu1 %1283  ;;  %v1932_v7 = vld [vmem:[%s3324_s7] sm:$0x1] }
 0x102   :  { %v1272_v16 = vmax.f32 %v1268_v12, 0.0  ;;  %v1267_v17 = vadd.f32 %v1258_v15, %v1232_v14  ;;  %v3161_v19 = vand.u32 4294901760, %v1269_v9  ;;  %v1463_v26 = vsub.f32 %v1270_v4, %v3155_v10 }
 0x104   :  { %v3166_v21 = vand.u32 4294901760, %v1272_v16  ;;  %v1271_v22 = vmax.f32 %v1267_v17, 0.0  ;;  %v1470_v31 = vsub.f32 %v1269_v9, %v3161_v19  ;;  %v1464_v36 = vand.u32 4294901760, %v1463_v26 }
 0x105   :  { %v1936_v17 = vsel %vm1301_vm3, %v1932_v7, 0  ;;  %v1934_v7 = vstv %s3325_s8  ;;  %s2846_s8 = scalar_lea.vmem %s2431_s2, 16 }
 0x106   :  { %v1449_v28 = vsub.f32 %v1272_v16, %v3166_v21  ;;  %v3171_v29 = vand.u32 4294901760, %v1271_v22  ;;  %2690 = vmatprep.subr.mxu0 %v3166_v21  ;;  %v1471_v41 = vand.u32 4294901760, %v1470_v31  ;;  %v1465_v45 = vsub.f32 %v1463_v26, %v1464_v36  ;;  %p2847_p0 = scmp.ne.s32.totalorder %s2431_s2, %s2846_s8  ;;  %p2852_p2 = scmp.lt.s32.totalorder %s2850_s28, %s2846_s8 }
 0x107   :  { %2691 = vmatpush3.msra.mxu0 %v3166_v21 }
 0x108   :  { %v1456_v33 = vsub.f32 %v1271_v22, %v3171_v29  ;;  %2692 = vmatprep.subr.mxu0 %v3171_v29  ;;  %v1450_v34 = vand.u32 4294901760, %v1449_v28  ;;  %v1472_v48 = vsub.f32 %v1470_v31, %v1471_v41  ;;  %v1466_v49 = vand.u32 4294901760, %v1465_v45  ;;  %p2853_p3 = por %p2852_p2, %p2851_p1 }
 0x109   :  { %2693 = vmatpush3.msra.mxu0 %v3171_v29 }
 0x10a   :  { %2694 = vmatprep.subr.mxu0 %v3155_v10  ;;  %v1451_v38 = vsub.f32 %v1449_v28, %v1450_v34  ;;  %v1457_v39 = vand.u32 4294901760, %v1456_v33  ;;  %v1473_v51 = vand.u32 4294901760, %v1472_v48  ;;  %p2854_p4 = pnand %p2853_p3, %p2847_p0 }
 0x10b   :  { %2695 = vmatpush3.msra.mxu0 %v3155_v10 }
 0x10c   :  { %2696 = vmatprep.subr.mxu0 %v3161_v19  ;;  %v1452_v42 = vand.u32 4294901760, %v1451_v38  ;;  %v1458_v43 = vsub.f32 %v1456_v33, %v1457_v39 }
 0x10d   :  { %2697 = vmatpush3.msra.mxu0 %v3161_v19 }
 0x10e   :  { %2699 = vmatmul.mubr.f32.vlgmr.msra.gmra.mxu0 %v1397_v37  ;;  %2704 = vmatprep.subr.mxu1 %v1452_v42  ;;  %v1459_v46 = vand.u32 4294901760, %v1458_v43 }
 0x10f   :  { %2718 = vmatprep.subr.mxu0 %v1449_v28  ;;  %2705 = vmatpush3.msra.mxu1 %v1452_v42 }
 0x110   :  { %2719 = vmatpush3.msra.mxu0 %v1449_v28  ;;  %2706 = vmatprep.subr.mxu1 %v1459_v46 }
 0x111   :  { %2720 = vmatprep.subr.mxu0 %v1456_v33  ;;  %2701 = vmatprep.mubr.f32.mxu0 %v1407_v44 }
 0x112   :  { %2707 = vmatpush3.msra.mxu1 %v1459_v46  ;;  %2721 = vmatpush3.msra.mxu0 %v1456_v33 }
 0x113   :  { %2702 = vmatmul.mubr.f32.gmra.mxu0 %v1417_v47  ;;  %2708 = vmatprep.subr.mxu1 %v1466_v49 }
 0x114   :  { %2722 = vmatprep.subr.mxu0 %v1463_v26  ;;  %2709 = vmatpush3.msra.mxu1 %v1466_v49 }
 0x115   :  { %2723 = vmatpush3.msra.mxu0 %v1463_v26  ;;  %2710 = vmatprep.subr.mxu1 %v1473_v51  ;;  %v3242_v26 = vand.u32 4294901760, %v1936_v17 }
 0x116   :  { %2724 = vmatprep.subr.mxu0 %v1470_v31  ;;  %2711 = vmatpush3.msra.mxu1 %v1473_v51 }
 0x117   :  { %2725 = vmatpush3.msra.mxu0 %v1470_v31  ;;  %2713 = vmatmul.mubr.f32.vlgmr.msra.gmra.mxu1 %v3144_v50 }
 0x118   :  { %2726 = vmatprep.mubr.f32.mxu0 %v3127_v24  ;;  %2732 = vmatprep.subr.mxu1 %v3166_v21  ;;  %v2869_v24 = vmov 0.0  }
 0x119   :  { %2746 = vmatprep.subr.mxu0 %v1450_v34  ;;  %2727 = vmatmul.mubr.f32.vlgmr.msra.gmra.mxu0 %v3149_v2 }
 0x11a   :  { %2733 = vmatpush3.msra.mxu1 %v3166_v21  ;;  %2747 = vmatpush3.msra.mxu0 %v1450_v34 }
 0x11b   :  { %2734 = vmatprep.subr.mxu1 %v3171_v29  ;;  %2748 = vmatprep.subr.mxu0 %v1457_v39 }
 0x11c   :  { %2715 = vmatprep.mubr.f32.mxu1 %v3151_v3  ;;  %2735 = vmatpush3.msra.mxu1 %v3171_v29 }
 0x11d   :  { %2749 = vmatpush3.msra.mxu0 %v1457_v39  ;;  %2716 = vmatmul.mubr.f32.gmra.mxu1 %v3153_v11 }
 0x11e   :  { %2736 = vmatprep.subr.mxu1 %v3155_v10  ;;  %2750 = vmatprep.subr.mxu0 %v1464_v36 }
 0x11f   :  { %2729 = vmatprep.mubr.f32.mxu0 %v3158_v13  ;;  %2737 = vmatpush3.msra.mxu1 %v3155_v10 }
 0x120   :  { %2751 = vmatpush3.msra.mxu0 %v1464_v36  ;;  %2738 = vmatprep.subr.mxu1 %v3161_v19  ;;  %v3245_v36 = vsub.f32 %v1936_v17, %v3242_v26 }
 0x121   :  { %2730 = vmatmul.mubr.f32.gmra.mxu0 %v3164_v20  ;;  %2752 = vmatprep.subr.mxu0 %v1471_v41 }
 0x122   :  { %2739 = vmatpush3.msra.mxu1 %v3161_v19  ;;  %2740 = vmatprep.mubr.f32.mxu1 %v1385_v25  ;;  %v2009_v46 = vand.u32 4294901760, %v3245_v36 }
 0x123   :  { %2753 = vmatpush3.msra.mxu0 %v1471_v41  ;;  %2741 = vmatmul.mubr.f32.vlgmr.msra.gmra.mxu1 %v1395_v18 }
 0x124   :  { %2760 = vmatprep.subr.mxu1 %v3166_v21  ;;  %2754 = vmatprep.mubr.f32.mxu0 %v3124_v23 }
 0x125   :  { %2761 = vmatpush3.msra.mxu1 %v3166_v21  ;;  %2755 = vmatmul.mubr.f32.vlgmr.msra.gmra.mxu0 %v3144_v50 }
 0x126   :  { %2762 = vmatprep.subr.mxu1 %v3171_v29  ;;  %2743 = vmatprep.mubr.f32.mxu1 %v1405_v27 }
 0x127   :  { %2763 = vmatpush3.msra.mxu1 %v3171_v29  ;;  %2757 = vmatprep.mubr.f32.mxu0 %v3151_v3 }
 0x128   :  { %2744 = vmatmul.mubr.f32.gmra.mxu1 %v1415_v32  ;;  %2764 = vmatprep.subr.mxu1 %v3155_v10 }
 0x129   :  { %2765 = vmatpush3.msra.mxu1 %v3155_v10  ;;  %2758 = vmatmul.mubr.f32.gmra.mxu0 %v3153_v11 }
 0x12a   :  { %2766 = vmatprep.subr.mxu1 %v3161_v19  ;;  %2768 = vmatprep.mubr.f32.mxu1 %v3124_v23 }
 0x12b   :  { %2767 = vmatpush3.msra.mxu1 %v3161_v19  ;;  %2774 = vmatprep.subr.mxu0 %v2869_v24 }
 0x12c   :  { %2769 = vmatmul.mubr.f32.vlgmr.msra.gmra.mxu1 %v3144_v50  ;;  %2785 = vmatprep.subr.mxu1 %v2869_v24 }
 0x12d   :  { %2771 = vmatprep.mubr.f32.mxu1 %v3151_v3  ;;  %2782 = vmatprep.mubr.msk.f32.mxu0 %vm2870_vm4, %v2869_v24 }
 0x130   :  { %2772 = vmatmul.mubr.f32.gmra.mxu1 %v3153_v11 }
 0x131   :  { %2793 = vmatprep.mubr.msk.f32.mxu1 %vm2870_vm4, %v2869_v24 }
 0x1ce   :  { %v2700_v23 = vpop.f32.mrf.mxu0 }
 0x1cf   :  { %v1400_v61 = vadd.f32 %v2700_v23, %v1289_v60 }
 0x1d0   :  { %v1389_v25 = vpop.f32.mrf.mxu0 }
 0x1d1   :  { %v1390_v0 = vadd.f32 %v1389_v25, %v1284_v63 }
 0x1d3   :  { %v2703_v52 = vpop.f32.mrf.mxu0 }
 0x1d4   :  { %v1420_v3 = vadd.f32 %v2703_v52, %v1299_v54  ;;  %v2010_v52 = vsub.f32 %v3245_v36, %v2009_v46 }
 0x1d5   :  { %v1409_v50 = vpop.f32.mrf.mxu0 }
 0x1d6   :  { %v1410_v8 = vadd.f32 %v1409_v50, %v1294_v57 }
 0x1d7   :  { %v2714_v53 = vpop.f32.mrf.mxu1 }
 0x1d8   :  { %v1517_v1 = vadd.f32 %v2714_v53, %v1400_v61 }
 0x1d9   :  { %v1510_v55 = vpop.f32.mrf.mxu1  ;;  %v2728_v56 = vpop.f32.mrf.mxu0 }
 0x1da   :  { %v1511_v4 = vadd.f32 %v1510_v55, %v1390_v0  ;;  %v1616_v11 = vadd.f32 %v2728_v56, %v1517_v1 }
 0x1db   :  { %v1608_v59 = vpop.f32.mrf.mxu0 }
 0x1dc   :  { %v1609_v15 = vadd.f32 %v1608_v59, %v1511_v4 }
 0x1dd   :  { %v2717_v58 = vpop.f32.mrf.mxu1 }
 0x1de   :  { %v1529_v9 = vadd.f32 %v2717_v58, %v1420_v3  ;;  %v2011_v58 = vand.u32 4294901760, %v2010_v52 }
 0x1df   :  { %v1522_v62 = vpop.f32.mrf.mxu1 }
 0x1e0   :  { %v1523_v10 = vadd.f32 %v1522_v62, %v1410_v8 }
 0x1e1   :  { %v2731_v2 = vpop.f32.mrf.mxu0 }
 0x1e2   :  { %v1630_v19 = vadd.f32 %v2731_v2, %v1529_v9 }
 0x1e3   :  { %v1622_v5 = vpop.f32.mrf.mxu0  ;;  %v2742_v6 = vpop.f32.mrf.mxu1 }
 0x1e4   :  { %v1715_v13 = vadd.f32 %v2742_v6, %v1616_v11  ;;  %v1623_v27 = vadd.f32 %v1622_v5, %v1523_v10 }
 0x1e5   :  { %v1706_v12 = vpop.f32.mrf.mxu1  ;;  %v2756_v14 = vpop.f32.mrf.mxu0 }
 0x1e6   :  { %v1707_v20 = vadd.f32 %v1706_v12, %v1609_v15  ;;  %v1820_v28 = vadd.f32 %v2756_v14, %v1715_v13 }
 0x1e7   :  { %v1813_v16 = vpop.f32.mrf.mxu0 }
 0x1e8   :  { %v2745_v18 = vpop.f32.mrf.mxu1  ;;  %v1814_v31 = vadd.f32 %v1813_v16, %v1707_v20 }
 0x1e9   :  { %v2759_v22 = vpop.f32.mrf.mxu0  ;;  %v1731_v29 = vadd.f32 %v2745_v18, %v1630_v19 }
 0x1ea   :  { %v1722_v21 = vpop.f32.mrf.mxu1 }
 0x1eb   :  { %v1723_v32 = vadd.f32 %v1722_v21, %v1623_v27  ;;  %v1825_v34 = vpop.f32.mrf.mxu0  ;;  %v1832_v37 = vadd.f32 %v2759_v22, %v1731_v29 }
 0x1ec   :  { %v2770_v30 = vpop.f32.mrf.mxu1 }
 0x1ed   :  { %v1913_v33 = vadd.f32 %v2770_v30, %v1820_v28  ;;  %v1826_v41 = vadd.f32 %v1825_v34, %v1723_v32 }
 0x1ee   :  { %v1906_v35 = vpop.f32.mrf.mxu1 }
 0x1ef   :  { %v1929_v38 = vmax.f32 %v1913_v33, 0.0  ;;  %v1907_v39 = vadd.f32 %v1906_v35, %v1814_v31 }
 0x1f0   :  { %v2773_v40 = vpop.f32.mrf.mxu1 }
 0x1f1   :  { %v3247_v42 = vand.u32 4294901760, %v1929_v38  ;;  %v1928_v43 = vmax.f32 %v1907_v39, 0.0  ;;  %v1925_v44 = vadd.f32 %v2773_v40, %v1832_v37 }
 0x1f2   :  { %v1918_v45 = vpop.f32.mrf.mxu1 }
 0x1f3   :  { %v3250_v47 = vand.u32 4294901760, %v1928_v43  ;;  %v1931_v48 = vmax.f32 %v1925_v44, 0.0  ;;  %v1919_v49 = vadd.f32 %v1918_v45, %v1826_v41  ;;  %v2057_v51 = vsub.f32 %v1929_v38, %v3247_v42 }
 0x1f5   :  { %v3253_v23 = vand.u32 4294901760, %v1931_v48  ;;  %v1930_v25 = vmax.f32 %v1919_v49, 0.0  ;;  %v2064_v50 = vsub.f32 %v1928_v43, %v3250_v47  ;;  %v2058_v55 = vand.u32 4294901760, %v2057_v51 }
 0x1f7   :  { %v2043_v53 = vsub.f32 %v1931_v48, %v3253_v23  ;;  %v3260_v54 = vand.u32 4294901760, %v1930_v25  ;;  %2775 = vmatpush3.msra.mxu0 %v3253_v23  ;;  %v2065_v59 = vand.u32 4294901760, %v2064_v50  ;;  %v2059_v62 = vsub.f32 %v2057_v51, %v2058_v55 }
 0x1f8   :  { %2776 = vmatprep.subr.mxu0 %v2869_v24 }
 0x1f9   :  { %v2044_v56 = vand.u32 4294901760, %v2043_v53  ;;  %v2050_v57 = vsub.f32 %v1930_v25, %v3260_v54  ;;  %2777 = vmatpush3.msra.mxu0 %v3260_v54  ;;  %v2066_v1 = vsub.f32 %v2064_v50, %v2065_v59  ;;  %v2060_v3 = vand.u32 4294901760, %v2059_v62 }
 0x1fa   :  { %2778 = vmatprep.subr.mxu0 %v2869_v24 }
 0x1fb   :  { %v2045_v60 = vsub.f32 %v2043_v53, %v2044_v56  ;;  %v2051_v61 = vand.u32 4294901760, %v2050_v57  ;;  %2779 = vmatpush3.msra.mxu0 %v3247_v42  ;;  %v2067_v4 = vand.u32 4294901760, %v2066_v1 }
 0x1fc   :  { %2780 = vmatprep.subr.mxu0 %v2869_v24 }
 0x1fd   :  { %v2052_v63 = vsub.f32 %v2050_v57, %v2051_v61  ;;  %2781 = vmatpush3.msra.mxu0 %v3250_v47  ;;  %v2046_v0 = vand.u32 4294901760, %v2045_v60 }
 0x1fe   :  { %2796 = vmatprep.subr.mxu0 %v2869_v24  ;;  %2783 = vmatmul.mubr.f32.vlgmr.msra.gmra.mxu0 %v2011_v58 }
 0x1ff   :  { %2786 = vmatpush3.msra.mxu1 %v2046_v0  ;;  %2797 = vmatpush3.msra.mxu0 %v2043_v53  ;;  %v2053_v2 = vand.u32 4294901760, %v2052_v63 }
 0x200   :  { %2787 = vmatprep.subr.mxu1 %v2869_v24  ;;  %2798 = vmatprep.subr.mxu0 %v2869_v24 }
 0x201   :  { %2788 = vmatpush3.msra.mxu1 %v2053_v2  ;;  %2799 = vmatpush3.msra.mxu0 %v2050_v57 }
 0x202   :  { %2789 = vmatprep.subr.mxu1 %v2869_v24  ;;  %2800 = vmatprep.subr.mxu0 %v2869_v24 }
 0x203   :  { %2790 = vmatpush3.msra.mxu1 %v2060_v3  ;;  %2801 = vmatpush3.msra.mxu0 %v2057_v51 }
 0x204   :  { %2791 = vmatprep.subr.mxu1 %v2869_v24  ;;  %2802 = vmatprep.subr.mxu0 %v2869_v24 }
 0x205   :  { %2792 = vmatpush3.msra.mxu1 %v2067_v4  ;;  %2803 = vmatpush3.msra.mxu0 %v2064_v50 }
 0x206   :  { %2794 = vmatmul.mubr.f32.vlgmr.msra.gmra.mxu1 %v3242_v26  ;;  %2804 = vmatprep.mubr.msk.f32.mxu0 %vm2870_vm4, %v2869_v24 }
 0x207   :  { %2807 = vmatprep.subr.mxu1 %v2869_v24  ;;  %2818 = vmatprep.subr.mxu0 %v2869_v24 }
 0x208   :  { %2805 = vmatmul.mubr.f32.vlgmr.msra.gmra.mxu0 %v3245_v36  ;;  %2808 = vmatpush3.msra.mxu1 %v3253_v23 }
 0x209   :  { %2819 = vmatpush3.msra.mxu0 %v2044_v56  ;;  %2809 = vmatprep.subr.mxu1 %v2869_v24 }
 0x20a   :  { %2820 = vmatprep.subr.mxu0 %v2869_v24  ;;  %2810 = vmatpush3.msra.mxu1 %v3260_v54 }
 0x20b   :  { %2821 = vmatpush3.msra.mxu0 %v2051_v61  ;;  %2811 = vmatprep.subr.mxu1 %v2869_v24 }
 0x20c   :  { %2822 = vmatprep.subr.mxu0 %v2869_v24  ;;  %2812 = vmatpush3.msra.mxu1 %v3247_v42 }
 0x20d   :  { %2823 = vmatpush3.msra.mxu0 %v2058_v55  ;;  %2813 = vmatprep.subr.mxu1 %v2869_v24 }
 0x20e   :  { %2824 = vmatprep.subr.mxu0 %v2869_v24  ;;  %2814 = vmatpush3.msra.mxu1 %v3250_v47 }
 0x20f   :  { %2815 = vmatprep.mubr.msk.f32.mxu1 %vm2870_vm4, %v2869_v24  ;;  %2825 = vmatpush3.msra.mxu0 %v2065_v59 }
 0x210   :  { %2816 = vmatmul.mubr.f32.vlgmr.msra.gmra.mxu1 %v2009_v46  ;;  %2829 = vmatprep.subr.mxu1 %v2869_v24 }
 0x211   :  { %2826 = vmatprep.mubr.msk.f32.mxu0 %vm2870_vm4, %v2869_v24  ;;  %2830 = vmatpush3.msra.mxu1 %v3253_v23 }
 0x212   :  { %2827 = vmatmul.mubr.f32.vlgmr.msra.gmra.mxu0 %v3242_v26  ;;  %2831 = vmatprep.subr.mxu1 %v2869_v24 }
 0x213   :  { %2832 = vmatpush3.msra.mxu1 %v3260_v54  ;;  %2837 = vmatprep.mubr.msk.f32.mxu1 %vm2870_vm4, %v2869_v24 }
 0x214   :  { %2833 = vmatprep.subr.mxu1 %v2869_v24 }
 0x215   :  { %2834 = vmatpush3.msra.mxu1 %v3247_v42 }
 0x216   :  { %2835 = vmatprep.subr.mxu1 %v2869_v24 }
 0x217   :  { %2836 = vmatpush3.msra.mxu1 %v3250_v47 }
 0x218   :  { %2838 = vmatmul.mubr.f32.vlgmr.msra.gmra.mxu1 %v3242_v26 }
 0x2be   :  { %v2013_v5 = vpop.f32.mrf.mxu0 }
 0x2bf   :  { %v2014_v12 = vadd.f32 %v2013_v5, %v1934_v7 }
 0x2c0   :  { %v2784_v6 = vpop.f32.mrf.mxu0 }
 0x2c6   :  { %v2104_v8 = vpop.f32.mrf.mxu1 }
 0x2c7   :  { %v2105_v15 = vadd.f32 %v2104_v8, %v2014_v12 }
 0x2c8   :  { %v2795_v11 = vpop.f32.mrf.mxu1  ;;  %v2184_v9 = vpop.f32.mrf.mxu0 }
 0x2c9   :  { %v2185_v13 = vadd.f32 %v2184_v9, %v2105_v15 }
 0x2ca   :  { %v2806_v14 = vpop.f32.mrf.mxu0 }
 0x2d0   :  { %v2261_v10 = vpop.f32.mrf.mxu1 }
 0x2d1   :  { %v2262_v17 = vadd.f32 %v2261_v10, %v2185_v13 }
 0x2d2   :  { %v2817_v16 = vpop.f32.mrf.mxu1  ;;  %v2344_v24 = vpop.f32.mrf.mxu0 }
 0x2d3   :  { %v2345_v19 = vadd.f32 %v2344_v24, %v2262_v17 }
 0x2d4   :  { %v2828_v18 = vpop.f32.mrf.mxu0 }
 0x2d8   :  { %v2419_v20 = vpop.f32.mrf.mxu1 }
 0x2d9   :  { %v2420_v21 = vadd.f32 %v2419_v20, %v2345_v19 }
 0x2da   :  { %v2839_v22 = vpop.f32.mrf.mxu1 }
 0x2db   :  { %2423 = vst [vmem:[#allocation3] sm:$0x1] %v2420_v21 }
 0x2dc   :  { %2857 = shalt.err (!%p2854_p4)
}
 0x2dd   :  { %2433 = dma.vmem_to_hbm [thread:$0]  %s2431_s2, 16, %s3326_s9, [#allocation4]  }
 0x2de   :  { %2866 = dma.done.wait [#allocation4], 16  }
 0x2df   :  { %2867 = vsyncadd [#allocation4], 4294967280 }
 0x2e0   :  { %2437 = vsyncpa [#allocation4], 1 }

</bundles_post_ra>
